<compile_context>
chip_gen: v5e
topology: v5e:2x2
jax: 0.10.0
libtpu: 0.0.40
codegen_flags: <defaults>
</compile_context>

<pallas_src>
import functools
import math

import jax
import jax.numpy as jnp
from jax.experimental import pallas as pl
from jax.experimental.pallas import tpu as pltpu


def _round_up(v, mult):
    return ((v + mult - 1) // mult) * mult


def _temporal_nf_kernel(xt_ref, w1t_ref, b1t_ref, w2t_ref, b2t_ref,
                        z_ref, stats_ref, *, n_flows, d1, d2, dim):
    """One batch tile. Feature-major: features on sublanes, batch on lanes."""
    xt = xt_ref[...]                       # (D, T) float32
    x1 = xt[:d1, :]                        # pass-through half (never modified)
    x2 = xt[d1:, :]                        # transformed half

    # ---- conditioner, fused across all flows, both stages on the MXU --------
    # Every coupling layer conditions only on x1, so all hidden activations
    # and all (s_i, t_i) can be computed up front.
    h_all = jnp.tanh(
        jnp.dot(w1t_ref[...], x1, preferred_element_type=jnp.float32)
        + b1t_ref[...])                                    # (n_flows*H, T)
    st_all = jnp.dot(w2t_ref[...], h_all,
                     preferred_element_type=jnp.float32) + b2t_ref[...]

    # ---- sequential (cheap, VPU/EUP-only) coupling chain ---------------------
    s_sum = None
    for i in range(n_flows):
        s = st_all[i * 2 * d2: i * 2 * d2 + d2, :]           # (d2, T) log-scale
        t = st_all[i * 2 * d2 + d2: (i + 1) * 2 * d2, :]     # (d2, T) shift
        x2 = x2 * jnp.exp(s) + t
        s_sum = s if s_sum is None else s_sum + s
    log_det = jnp.sum(s_sum, axis=0, keepdims=True)           # (1, T)

    # ---- standard-normal prior log-prob on the first `dim` features ----------
    if dim <= d1:
        sq = jnp.sum(x1[:dim, :] * x1[:dim, :], axis=0, keepdims=True)
    else:
        sq = (jnp.sum(x1 * x1, axis=0, keepdims=True)
              + jnp.sum(x2[:dim - d1, :] * x2[:dim - d1, :], axis=0,
                        keepdims=True))
    prior_lp = -0.5 * sq - dim * (0.5 * math.log(2.0 * math.pi))   # (1, T)
    px = jnp.exp(prior_lp + log_det)

    # ---- two full-ref, lane-dense stores; no padding rows --------------------
    z_ref[...] = jnp.concatenate([x1, x2], axis=0)             # (n_feat, T)
    stats_ref[...] = jnp.concatenate([prior_lp, log_det, px], axis=0)  # (3, T)


def fuse_flow_params(w1, b1, w2, b2):
    """Hoisted, per-parameter-set fusion of the flow conditioner weights."""
    n_flows, d1, hidden = w1.shape
    two_d2 = w2.shape[2]
    w1t = jnp.transpose(w1, (0, 2, 1)).reshape(
        n_flows * hidden, d1).astype(jnp.float32)
    b1t = b1.reshape(n_flows * hidden, 1).astype(jnp.float32)
    w2t_bd = jnp.zeros((n_flows * two_d2, n_flows * hidden), jnp.float32)
    for i in range(n_flows):
        w2t_bd = w2t_bd.at[i * two_d2:(i + 1) * two_d2,
                           i * hidden:(i + 1) * hidden].set(
                               w2[i].T.astype(jnp.float32))
    b2t = b2.reshape(n_flows * two_d2, 1).astype(jnp.float32)
    return w1t, b1t, w2t_bd, b2t


def temporal_nf_forward(x, w1t, b1t, w2t_bd, b2t, *, dim, n_flows,
                        tile_m=4096):
    """Pallas equivalent of TemporalNormalizingFlowModel.forward(x)."""
    m, n_feat = x.shape
    nh, d1 = w1t.shape
    hidden = nh // n_flows
    d2 = n_feat - d1
    assert nh == n_flows * hidden
    assert b1t.shape == (nh, 1)
    assert w2t_bd.shape == (n_flows * 2 * d2, nh)
    assert b2t.shape == (n_flows * 2 * d2, 1)

    # -- batch tiling: big tiles amortize per-step overhead; cap at ceil(m/2)
    #    so grid >= 2 and both v7x TensorCores get work -------------------------
    tile_m = _round_up(max(tile_m, 128), 128)
    max_tile = max(128, _round_up((m + 1) // 2, 128))
    tile_m = min(tile_m, max_tile)
    m_pad = _round_up(m, tile_m)

    xt = jnp.transpose(x.astype(jnp.float32))           # (D, m) feature-major
    if m_pad != m:
        xt = jnp.pad(xt, ((0, 0), (0, m_pad - m)))

    grid = (m_pad // tile_m,)
    kernel = functools.partial(_temporal_nf_kernel, n_flows=n_flows,
                               d1=d1, d2=d2, dim=dim)

    z_t, stats = pl.pallas_call(
        kernel,
        out_shape=(jax.ShapeDtypeStruct((n_feat, m_pad), jnp.float32),
                   jax.ShapeDtypeStruct((3, m_pad), jnp.float32)),
        grid=grid,
        in_specs=[
            pl.BlockSpec((n_feat, tile_m), lambda i: (0, i)),            # x^T tile
            pl.BlockSpec((nh, d1), lambda i: (0, 0)),                    # W1 fused
            pl.BlockSpec((nh, 1), lambda i: (0, 0)),                     # b1 fused
            pl.BlockSpec((n_flows * 2 * d2, nh), lambda i: (0, 0)),      # W2 blockdiag
            pl.BlockSpec((n_flows * 2 * d2, 1), lambda i: (0, 0)),       # b2 fused
        ],
        out_specs=(pl.BlockSpec((n_feat, tile_m), lambda i: (0, i)),     # z^T
                   pl.BlockSpec((3, tile_m), lambda i: (0, i))),         # stats
        compiler_params=pltpu.CompilerParams(
            dimension_semantics=("parallel",),      # shard row tiles over TCs
            vmem_limit_bytes=32 * 1024 * 1024),
    )(xt, w1t, b1t, w2t_bd, b2t)

    # Unpack (drop batch padding; PyTorch returns (m, D) z and 1-D scalars).
    z = z_t[:, :m].T
    prior_logprob = stats[0, :m]
    log_det = stats[1, :m]
    px = stats[2, :m]
    return z, prior_logprob, log_det, px


def _reference_forward(x, w1, b1, w2, b2, dim):
    """Pure-JAX reference (mirrors the PyTorch semantics) for verification."""
    n_flows, d1, _ = w1.shape
    d2 = x.shape[1] - d1
    log_det = jnp.zeros((x.shape[0],), jnp.float32)
    for i in range(n_flows):
        x1, x2 = x[:, :d1], x[:, d1:]
        h = jnp.tanh(x1 @ w1[i] + b1[i])
        st = h @ w2[i] + b2[i]
        s, t = st[:, :d2], st[:, d2:]
        x2 = x2 * jnp.exp(s) + t
        x = jnp.concatenate([x1, x2], axis=1)
        log_det = log_det + jnp.sum(s, axis=1)
    prior_lp = (-0.5 * jnp.sum(x[:, :dim] ** 2, axis=1)
                - 0.5 * dim * math.log(2.0 * math.pi))
    return x, prior_lp, log_det, jnp.exp(prior_lp + log_det)


if __name__ == "__main__":
    # Small, module-consistent shapes: m rows of (dim data columns + 1 time col).
    m = 300              # not a multiple of 128 -> exercises padding
    dim = 7
    D = dim + 1          # data + time
    d1 = 4               # pass-through half of the coupling split
    d2 = D - d1
    H = 32               # conditioner hidden width
    n_flows = 3

    key = jax.random.PRNGKey(0)
    kx, kw1, kb1, kw2, kb2 = jax.random.split(key, 5)

    x = jax.random.normal(kx, (m, D), dtype=jnp.float32)
    w1 = 0.1 * jax.random.normal(kw1, (n_flows, d1, H), dtype=jnp.float32)
    b1 = 0.1 * jax.random.normal(kb1, (n_flows, 1, H), dtype=jnp.float32)
    w2 = 0.1 * jax.random.normal(kw2, (n_flows, H, 2 * d2), dtype=jnp.float32)
    b2 = 0.1 * jax.random.normal(kb2, (n_flows, 1, 2 * d2), dtype=jnp.float32)

    # Parameter fusion hoisted out of the per-call path (done once).
    fused = fuse_flow_params(w1, b1, w2, b2)
    jax.block_until_ready(fused)

    # Default tile_m (4096) is capped to ceil(m/2)=256 here -> grid=(2,),
    # exercising both the padding path and the multi-step (2-TC) grid.
    fwd = jax.jit(functools.partial(temporal_nf_forward, dim=dim,
                                    n_flows=n_flows))
    z, prior_logprob, log_det, px = fwd(x, *fused)
    jax.block_until_ready((z, prior_logprob, log_det, px))

    # Correctness check against the pure-JAX reference.
    z_r, lp_r, ld_r, px_r = _reference_forward(x, w1, b1, w2, b2, dim)
    assert jnp.allclose(z, z_r, atol=5e-4, rtol=5e-3)
    assert jnp.allclose(prior_logprob, lp_r, atol=5e-4, rtol=5e-3)
    assert jnp.allclose(log_det, ld_r, atol=5e-4, rtol=5e-3)
    assert jnp.allclose(px, px_r, atol=5e-4, rtol=5e-3)

    print("KERNEL_OK")
</pallas_src>

<mosaic_0001>
module attributes {stable_mosaic.version = 11 : i64} {
  func.func @_temporal_nf_kernel(%arg0: i32, %arg1: memref<8x256xf32, #tpu.memory_space<vmem>>, %arg2: memref<96x4xf32, #tpu.memory_space<vmem>>, %arg3: memref<96x1xf32, #tpu.memory_space<vmem>>, %arg4: memref<24x96xf32, #tpu.memory_space<vmem>>, %arg5: memref<24x1xf32, #tpu.memory_space<vmem>>, %arg6: memref<8x256xf32, #tpu.memory_space<vmem>>, %arg7: memref<3x256xf32, #tpu.memory_space<vmem>>) attributes {dimension_semantics = [#tpu.dimension_semantics<parallel>], iteration_bounds = array<i64: 2>, scalar_prefetch = 0 : i64, scratch_operands = 0 : i64, tpu.core_type = #tpu.core_type<tc>, window_params = [{transform_indices = @transform_0, window_bounds = array<i64: 8, 256>}, {pipeline_mode = #tpu.pipeline_mode<synchronous>, transform_indices = @transform_1, window_bounds = array<i64: 96, 4>}, {pipeline_mode = #tpu.pipeline_mode<synchronous>, transform_indices = @transform_2, window_bounds = array<i64: 96, 1>}, {pipeline_mode = #tpu.pipeline_mode<synchronous>, transform_indices = @transform_3, window_bounds = array<i64: 24, 96>}, {pipeline_mode = #tpu.pipeline_mode<synchronous>, transform_indices = @transform_4, window_bounds = array<i64: 24, 1>}, {transform_indices = @transform_5, window_bounds = array<i64: 8, 256>}, {transform_indices = @transform_6, window_bounds = array<i64: 3, 256>}]} {
    %c0 = arith.constant 0 : index
    %c0_0 = arith.constant 0 : index
    %0 = vector.load %arg1[%c0, %c0_0] : memref<8x256xf32, #tpu.memory_space<vmem>>, vector<8x256xf32>
    %1 = vector.extract_strided_slice %0 {offsets = [0, 0], sizes = [4, 256], strides = [1, 1]} : vector<8x256xf32> to vector<4x256xf32>
    %2 = vector.extract_strided_slice %0 {offsets = [4, 0], sizes = [4, 256], strides = [1, 1]} : vector<8x256xf32> to vector<4x256xf32>
    %c0_1 = arith.constant 0 : index
    %c0_2 = arith.constant 0 : index
    %3 = vector.load %arg2[%c0_1, %c0_2] : memref<96x4xf32, #tpu.memory_space<vmem>>, vector<96x4xf32>
    %cst = arith.constant dense<0.000000e+00> : vector<96x256xf32>
    %4 = tpu.matmul %3, %1, %cst {dimension_numbers = #tpu.dot_dimension_numbers<[1], [0], [0], [1], [0, 0, 1, 1], [], []>} : vector<96x4xf32>, vector<4x256xf32>, vector<96x256xf32> -> vector<96x256xf32>
    %c0_3 = arith.constant 0 : index
    %c0_4 = arith.constant 0 : index
    %5 = vector.load %arg3[%c0_3, %c0_4] : memref<96x1xf32, #tpu.memory_space<vmem>>, vector<96x1xf32>
    %6 = vector.broadcast %5 : vector<96x1xf32> to vector<96x256xf32>
    %7 = arith.addf %4, %6 : vector<96x256xf32>
    %8 = math.tanh %7 : vector<96x256xf32>
    %c0_5 = arith.constant 0 : index
    %c0_6 = arith.constant 0 : index
    %9 = vector.load %arg4[%c0_5, %c0_6] : memref<24x96xf32, #tpu.memory_space<vmem>>, vector<24x96xf32>
    %cst_7 = arith.constant dense<0.000000e+00> : vector<24x256xf32>
    %10 = tpu.matmul %9, %8, %cst_7 {dimension_numbers = #tpu.dot_dimension_numbers<[1], [0], [0], [1], [0, 0, 1, 1], [], []>} : vector<24x96xf32>, vector<96x256xf32>, vector<24x256xf32> -> vector<24x256xf32>
    %c0_8 = arith.constant 0 : index
    %c0_9 = arith.constant 0 : index
    %11 = vector.load %arg5[%c0_8, %c0_9] : memref<24x1xf32, #tpu.memory_space<vmem>>, vector<24x1xf32>
    %12 = vector.broadcast %11 : vector<24x1xf32> to vector<24x256xf32>
    %13 = arith.addf %10, %12 : vector<24x256xf32>
    %14 = vector.extract_strided_slice %13 {offsets = [0, 0], sizes = [4, 256], strides = [1, 1]} : vector<24x256xf32> to vector<4x256xf32>
    %15 = vector.extract_strided_slice %13 {offsets = [4, 0], sizes = [4, 256], strides = [1, 1]} : vector<24x256xf32> to vector<4x256xf32>
    %16 = math.exp %14 : vector<4x256xf32>
    %17 = arith.mulf %2, %16 : vector<4x256xf32>
    %18 = arith.addf %17, %15 : vector<4x256xf32>
    %19 = vector.extract_strided_slice %13 {offsets = [8, 0], sizes = [4, 256], strides = [1, 1]} : vector<24x256xf32> to vector<4x256xf32>
    %20 = vector.extract_strided_slice %13 {offsets = [12, 0], sizes = [4, 256], strides = [1, 1]} : vector<24x256xf32> to vector<4x256xf32>
    %21 = math.exp %19 : vector<4x256xf32>
    %22 = arith.mulf %18, %21 : vector<4x256xf32>
    %23 = arith.addf %22, %20 : vector<4x256xf32>
    %24 = arith.addf %14, %19 : vector<4x256xf32>
    %25 = vector.extract_strided_slice %13 {offsets = [16, 0], sizes = [4, 256], strides = [1, 1]} : vector<24x256xf32> to vector<4x256xf32>
    %26 = vector.extract_strided_slice %13 {offsets = [20, 0], sizes = [4, 256], strides = [1, 1]} : vector<24x256xf32> to vector<4x256xf32>
    %27 = math.exp %25 : vector<4x256xf32>
    %28 = arith.mulf %23, %27 : vector<4x256xf32>
    %29 = arith.addf %28, %26 : vector<4x256xf32>
    %30 = arith.addf %24, %25 : vector<4x256xf32>
    %cst_10 = arith.constant dense<0.000000e+00> : vector<256xf32>
    %31 = vector.multi_reduction <add>, %30, %cst_10 [0] : vector<4x256xf32> to vector<256xf32>
    %32 = vector.shape_cast %31 : vector<256xf32> to vector<1x256xf32>
    %33 = arith.mulf %1, %1 : vector<4x256xf32>
    %cst_11 = arith.constant dense<0.000000e+00> : vector<256xf32>
    %34 = vector.multi_reduction <add>, %33, %cst_11 [0] : vector<4x256xf32> to vector<256xf32>
    %35 = vector.shape_cast %34 : vector<256xf32> to vector<1x256xf32>
    %36 = vector.extract_strided_slice %29 {offsets = [0, 0], sizes = [3, 256], strides = [1, 1]} : vector<4x256xf32> to vector<3x256xf32>
    %37 = vector.extract_strided_slice %29 {offsets = [0, 0], sizes = [3, 256], strides = [1, 1]} : vector<4x256xf32> to vector<3x256xf32>
    %38 = arith.mulf %36, %37 : vector<3x256xf32>
    %cst_12 = arith.constant dense<0.000000e+00> : vector<256xf32>
    %39 = vector.multi_reduction <add>, %38, %cst_12 [0] : vector<3x256xf32> to vector<256xf32>
    %40 = vector.shape_cast %39 : vector<256xf32> to vector<1x256xf32>
    %41 = arith.addf %35, %40 : vector<1x256xf32>
    %cst_13 = arith.constant -5.000000e-01 : f32
    %42 = vector.broadcast %cst_13 : f32 to vector<1x256xf32>
    %43 = arith.mulf %42, %41 : vector<1x256xf32>
    %cst_14 = arith.constant 6.4325695 : f32
    %44 = vector.broadcast %cst_14 : f32 to vector<1x256xf32>
    %45 = arith.subf %43, %44 : vector<1x256xf32>
    %46 = arith.addf %45, %32 : vector<1x256xf32>
    %47 = math.exp %46 : vector<1x256xf32>
    %48 = tpu.concatenate %1, %29 in 0 : vector<4x256xf32>, vector<4x256xf32> -> vector<8x256xf32>
    %c0_15 = arith.constant 0 : index
    %c0_16 = arith.constant 0 : index
    %49 = vector.load %arg6[%c0_15, %c0_16] : memref<8x256xf32, #tpu.memory_space<vmem>>, vector<8x256xf32>
    tpu.vector_store %arg6[%c0_15, %c0_16], %48 {strides = array<i32>} : memref<8x256xf32, #tpu.memory_space<vmem>>, vector<8x256xf32>,
    %50 = tpu.concatenate %45, %32, %47 in 0 : vector<1x256xf32>, vector<1x256xf32>, vector<1x256xf32> -> vector<3x256xf32>
    %c0_17 = arith.constant 0 : index
    %c0_18 = arith.constant 0 : index
    %51 = vector.load %arg7[%c0_17, %c0_18] : memref<3x256xf32, #tpu.memory_space<vmem>>, vector<3x256xf32>
    tpu.vector_store %arg7[%c0_17, %c0_18], %50 {strides = array<i32>} : memref<3x256xf32, #tpu.memory_space<vmem>>, vector<3x256xf32>,
    return
  }
  func.func @transform_0(%arg0: i32) -> (i32, i32) {
    %c0_i32 = arith.constant 0 : i32
    %c0_i32_0 = arith.constant 0 : i32
    return %c0_i32, %arg0 : i32, i32
  }
  func.func @transform_1(%arg0: i32) -> (i32, i32) {
    %c0_i32 = arith.constant 0 : i32
    %c0_i32_0 = arith.constant 0 : i32
    %c0_i32_1 = arith.constant 0 : i32
    return %c0_i32, %c0_i32_0 : i32, i32
  }
  func.func @transform_2(%arg0: i32) -> (i32, i32) {
    %c0_i32 = arith.constant 0 : i32
    %c0_i32_0 = arith.constant 0 : i32
    %c0_i32_1 = arith.constant 0 : i32
    return %c0_i32, %c0_i32_0 : i32, i32
  }
  func.func @transform_3(%arg0: i32) -> (i32, i32) {
    %c0_i32 = arith.constant 0 : i32
    %c0_i32_0 = arith.constant 0 : i32
    %c0_i32_1 = arith.constant 0 : i32
    return %c0_i32, %c0_i32_0 : i32, i32
  }
  func.func @transform_4(%arg0: i32) -> (i32, i32) {
    %c0_i32 = arith.constant 0 : i32
    %c0_i32_0 = arith.constant 0 : i32
    %c0_i32_1 = arith.constant 0 : i32
    return %c0_i32, %c0_i32_0 : i32, i32
  }
  func.func @transform_5(%arg0: i32) -> (i32, i32) {
    %c0_i32 = arith.constant 0 : i32
    %c0_i32_0 = arith.constant 0 : i32
    return %c0_i32, %arg0 : i32, i32
  }
  func.func @transform_6(%arg0: i32) -> (i32, i32) {
    %c0_i32 = arith.constant 0 : i32
    %c0_i32_0 = arith.constant 0 : i32
    return %c0_i32, %arg0 : i32, i32
  }
}

</mosaic_0001>

<bundles_post_ra>
// kernel: temporal_nf_forward.1
= control target key start
LH: loop header
LB: loop body
LE: loop exit
PB: predicated region body
PF: predicated region fallthrough
CT: control target
= control target key end

     0   :  { %s998_s21 = smov 0   ;;  %s1196_s0 = inlined_call_operand.vmem [shape: f32[8,512], index: 0, kind: input, shape index: {}]   ;;  %s1197_s1 = inlined_call_operand.vmem [shape: f32[96,4], index: 1, kind: input, shape index: {}]   ;;  %s1198_s2 = inlined_call_operand.vmem [shape: f32[96,1], index: 2, kind: input, shape index: {}]   ;;  %s1199_s3 = inlined_call_operand.vmem [shape: f32[24,96], index: 3, kind: input, shape index: {}]   ;;  %s1200_s4 = inlined_call_operand.vmem [shape: f32[24,1], index: 4, kind: input, shape index: {}]   ;;  %s1201_s5 = inlined_call_operand.vmem [shape: f32[8,512], index: 5, kind: output, shape index: {0}]   ;;  %s1202_s6 = inlined_call_operand.vmem [shape: f32[3,512], index: 6, kind: output, shape index: {1}]  }
   0x1 LB: > { %s829_s22 = sadd.s32 4294967295, %s960_s21   ;;  %p833_p0 = scmp.ge.s32.totalorder %s960_s21, 1  ;;  %s960_s21 = sphi %s998_s21, %s17_s21  }
   0x2   : > { %p216_p1 = scmp.lt.s32.totalorder %s960_s21, 3 }
   0x4   : > { %p217_p2 = pnand %p833_p0, %p216_p1 }
   0x5   : > { %s834_s25 = sshll.u32 (!%p217_p2), %s829_s22, 1 }
   0x6   : > { %220 = sbr.rel (%p217_p2) target bundleno = 435 (0x1b3), region = 40  ;;  %p252_p3 = scmp.lt.s32.totalorder (!%p217_p2), %s834_s25, 3 }
   0xb   : > { %v292_v0 = vld [vmem:[%s1198_s2 + $0x48] sm:$0xff]  ;;  %v962_v1 = vmov 0   ;;  %v294_v2 = vld [vmem:[%s1198_s2 + $0x58] sm:$0xff]  ;;  %s1204_s25 = smov (!%p252_p3, %s834_s25), 3  ;;  %vm392_vm0 = vcmask 1043456   ;;  %v271_v4 = vld [vmem:[%s1197_s1] sm:$0xff] }
   0xc   : > { %888 = vset.pattern.permute.xlu1 %v962_v1  ;;  %887 = vset.pattern.permute.xlu0 %v962_v1  ;;  %v290_v3 = vld [vmem:[%s1198_s2 + $0x38] sm:$0xff]  ;;  %s835_s30 = sshll.u32 %s1204_s25, 3  ;;  %vm355_vm1 = vcmask 31744   ;;  %v279_v7 = vld [vmem:[%s1197_s1 + $0x40] sm:$0xff]  ;;  %v293_v9 = vld [vmem:[%s1198_s2 + $0x50] sm:$0xff]  ;;  %vm550_vm2 = vcmask 785408  }
   0xd   : > { %342 = vperm.xlu1 %888, %v292_v0   ;;  %352 = vperm.xlu0 %887, %v294_v2   ;;  %s255_s9 = scalar_lea.vmem %s1196_s0, %s835_s30  ;;  %v291_v8 = vld [vmem:[%s1198_s2 + $0x40] sm:$0xff]  ;;  %v289_v10 = vld [vmem:[%s1198_s2 + $0x30] sm:$0xff]  ;;  %v280_v11 = vld [vmem:[%s1197_s1 + $0x48] sm:$0xff]  ;;  %vm696_vm3 = vcmask 1042432   ;;  %s261_s26 = scalar_lea.vmem %s1201_s5, %s835_s30  ;;  %vm727_vm4 = vcmask 1040384   ;;  %vm730_vm5 = vcmask 1041408  }
   0xe   : > { %889 = vset.pattern.permute.xlu2 %v962_v1  ;;  %v1026_v5 = vld [vmem:[%s255_s9] sm:$0xff]  ;;  %v1028_v6 = vld [vmem:[%s255_s9 + $0x8] sm:$0xff]  ;;  %v286_v15 = vld [vmem:[%s1198_s2 + $0x18] sm:$0xff]  ;;  %s839_s30 = sshll.u32 %s1204_s25, 2 }
   0xf   : > { %332 = vperm.xlu2 %889, %v290_v3   ;;  %840 = vmatpush.msk.msra.mxu0 %vm392_vm0, %v1026_v5  ;;  %v272_v12 = vld [vmem:[%s1197_s1 + $0x8] sm:$0xff]  ;;  %v287_v13 = vld [vmem:[%s1198_s2 + $0x20] sm:$0xff]  ;;  %v281_v16 = vld [vmem:[%s1197_s1 + $0x50] sm:$0xff]  ;;  %s267_s29 = scalar_lea.vmem %s1202_s6, %s839_s30 }
  0x10   : > { %853 = vmatpush.msk.msra.mxu1 %vm392_vm0, %v1028_v6  ;;  %877 = vmatpush.msk.msra.mxu3 %vm392_vm0, %v1028_v6  ;;  %v288_v14 = vld [vmem:[%s1198_s2 + $0x28] sm:$0xff]  ;;  %v273_v17 = vld [vmem:[%s1197_s1 + $0x10] sm:$0xff]  ;;  %v283_v20 = vld [vmem:[%s1198_s2] sm:$0xff] }
  0x11   : > { %841 = vmatmul.msk.f32.vlgmr.msra.gmra.mxu0 %vm355_vm1, %v271_v4  ;;  %854 = vmatmul.msk.f32.vlgmr.msra.gmra.mxu1 %vm355_vm1, %v271_v4  ;;  %v284_v18 = vld [vmem:[%s1198_s2 + $0x8] sm:$0xff]  ;;  %v285_v19 = vld [vmem:[%s1198_s2 + $0x10] sm:$0xff]  ;;  %v282_v21 = vld [vmem:[%s1197_s1 + $0x58] sm:$0xff] }
  0x12   : > { %862 = vmatmul.msk.f32.vlgmr.msra.gmra.mxu3 %vm355_vm1, %v279_v7  ;;  %876 = vmatpush.msk.msra.mxu2 %vm392_vm0, %v1026_v5  ;;  %v274_v22 = vld [vmem:[%s1197_s1 + $0x18] sm:$0xff]  ;;  %v532_v23 = vld [vmem:[%s1200_s4] sm:$0xff]  ;;  %v533_v24 = vld [vmem:[%s1200_s4 + $0x8] sm:$0xff] }
  0x13   : > { %850 = vmatmul.msk.f32.vlgmr.msra.gmra.mxu2 %vm355_vm1, %v280_v11  ;;  %v275_v25 = vld [vmem:[%s1197_s1 + $0x20] sm:$0xff]  ;;  %v534_v26 = vld [vmem:[%s1200_s4 + $0x10] sm:$0xff]  ;;  %v276_v27 = vld [vmem:[%s1197_s1 + $0x28] sm:$0xff] }
  0x14   : > { %v277_v28 = vld [vmem:[%s1197_s1 + $0x30] sm:$0xff]  ;;  %v278_v29 = vld [vmem:[%s1197_s1 + $0x38] sm:$0xff] }
  0x15   : > { %337 = vperm.xlu1 %888, %v291_v8   ;;  %347 = vperm.xlu0 %887, %v293_v9  }
  0x17   : > { %327 = vperm.xlu2 %889, %v289_v10  }
  0x19   : > { %842 = vmatmul.msk.f32.gmra.mxu0 %vm355_vm1, %v272_v12  ;;  %855 = vmatmul.msk.f32.gmra.mxu1 %vm355_vm1, %v272_v12 }
  0x1a   : > { %863 = vmatmul.msk.f32.gmra.mxu3 %vm355_vm1, %v280_v11 }
  0x1b   : > { %851 = vmatmul.msk.f32.gmra.mxu2 %vm355_vm1, %v281_v16 }
  0x1d   : > { %317 = vperm.xlu1 %888, %v287_v13   ;;  %322 = vperm.xlu0 %887, %v288_v14  }
  0x1f   : > { %312 = vperm.xlu2 %889, %v286_v15  }
  0x21   : > { %843 = vmatmul.msk.f32.gmra.mxu0 %vm355_vm1, %v273_v17  ;;  %856 = vmatmul.msk.f32.gmra.mxu1 %vm355_vm1, %v273_v17 }
  0x22   : > { %864 = vmatmul.msk.f32.gmra.mxu3 %vm355_vm1, %v281_v16 }
  0x23   : > { %852 = vmatmul.msk.f32.gmra.mxu2 %vm355_vm1, %v282_v21 }
  0x25   : > { %302 = vperm.xlu1 %888, %v284_v18   ;;  %307 = vperm.xlu0 %887, %v285_v19  }
  0x27   : > { %297 = vperm.xlu2 %889, %v283_v20  }
  0x29   : > { %844 = vmatmul.msk.f32.gmra.mxu0 %vm355_vm1, %v274_v22  ;;  %857 = vmatmul.msk.f32.gmra.mxu1 %vm355_vm1, %v274_v22 }
  0x2a   : > { %865 = vmatmul.msk.f32.gmra.mxu3 %vm355_vm1, %v282_v21 }
  0x2d   : > { %537 = vperm.xlu0 %887, %v532_v23   ;;  %542 = vperm.xlu1 %888, %v533_v24  }
  0x2f   : > { %547 = vperm.xlu2 %889, %v534_v26  }
  0x31   : > { %845 = vmatmul.msk.f32.gmra.mxu0 %vm355_vm1, %v275_v25  ;;  %858 = vmatmul.msk.f32.gmra.mxu1 %vm355_vm1, %v275_v25 }
  0x39   : > { %846 = vmatmul.msk.f32.gmra.mxu0 %vm355_vm1, %v276_v27  ;;  %859 = vmatmul.msk.f32.gmra.mxu1 %vm355_vm1, %v276_v27 }
  0x41   : > { %847 = vmatmul.msk.f32.gmra.mxu0 %vm355_vm1, %v277_v28  ;;  %860 = vmatmul.msk.f32.gmra.mxu1 %vm355_vm1, %v277_v28 }
  0x49   : > { %848 = vmatmul.msk.f32.gmra.mxu0 %vm355_vm1, %v278_v29  ;;  %861 = vmatmul.msk.f32.gmra.mxu1 %vm355_vm1, %v278_v29 }
  0x51   : > { %849 = vmatmul.msk.f32.gmra.mxu0 %vm355_vm1, %v279_v7 }
  0x69   : > { %v333_v62 = vpop.permute.xlu2 %332 }
  0x71   : > { %v328_v7 = vpop.permute.xlu2 %327 }
  0x79   : > { %v313_v15 = vpop.permute.xlu2 %312 }
  0x7f   : > { %v353_v36 = vpop.permute.xlu0 %352  ;;  %v343_v45 = vpop.permute.xlu1 %342 }
  0x81   : > { %v298_v29 = vpop.permute.xlu2 %297 }
  0x87   : > { %v348_v41 = vpop.permute.xlu0 %347  ;;  %v338_v58 = vpop.permute.xlu1 %337 }
  0x8e   : > { %v1131_v30 = vpop.f32.mrf.mxu0  ;;  %v1133_v31 = vpop.f32.mrf.mxu1 }
  0x8f   : > { %v323_v9 = vpop.permute.xlu0 %322  ;;  %v318_v11 = vpop.permute.xlu1 %317 }
  0x95   : > { %v493_v32 = vpop.f32.mrf.mxu3 }
  0x96   : > { %v1135_v33 = vpop.f32.mrf.mxu0  ;;  %v1137_v34 = vpop.f32.mrf.mxu1  ;;  %v494_v59 = vadd.f32 %v493_v32, %v338_v58 }
  0x97   : > { %v443_v35 = vpop.f32.mrf.mxu2  ;;  %v308_v20 = vpop.permute.xlu0 %307 }
  0x98   : > { %v444_v48 = vadd.f32 %v443_v35, %v343_v45  ;;  %v303_v25 = vpop.permute.xlu1 %302 }
  0x99   : > { %v473_v28 = vadd.f32 %v1137_v34, %v303_v25 }
  0x9d   : > { %v496_v37 = vpop.f32.mrf.mxu3 }
  0x9e   : > { %v1139_v38 = vpop.f32.mrf.mxu0  ;;  %v1141_v39 = vpop.f32.mrf.mxu1  ;;  %v497_v52 = vadd.f32 %v496_v37, %v343_v45 }
  0x9f   : > { %v446_v40 = vpop.f32.mrf.mxu2  ;;  %v476_v24 = vadd.f32 %v1141_v39, %v308_v20 }
  0xa0   : > { %v447_v44 = vadd.f32 %v446_v40, %v348_v41 }
  0xa2   : > { %890 = vtanh.f32 %v447_v44  ;;  %v423_v44 = vadd.f32 %v1139_v38, %v308_v20  ;;  %v529_v38 = vld [vmem:[%s1199_s3] sm:$0xff] }
  0xa5   : > { %v499_v42 = vpop.f32.mrf.mxu3 }
  0xa6   : > { %v1143_v43 = vpop.f32.mrf.mxu0  ;;  %v478_v46 = vpop.f32.mrf.mxu1  ;;  %v500_v50 = vadd.f32 %v499_v42, %v348_v41 }
  0xa7   : > { %v449_v47 = vpop.f32.mrf.mxu2  ;;  %v479_v18 = vadd.f32 %v478_v46, %v313_v15  ;;  %v426_v41 = vadd.f32 %v1143_v43, %v313_v15  ;;  %v420_v46 = vadd.f32 %v1135_v33, %v303_v25 }
  0xa8   : > { %v450_v49 = vadd.f32 %v449_v47, %v353_v36  ;;  %v891_v56 = vpop.eup %890 }
  0xaa   : > { %892 = vtanh.f32 %v450_v49 }
  0xab   : > { %894 = vtanh.f32 %v444_v48  ;;  %v417_v48 = vadd.f32 %v1131_v30, %v298_v29 }
  0xac   : > { %896 = vtanh.f32 %v500_v50 }
  0xad   : > { %v502_v51 = vpop.f32.mrf.mxu3 }
  0xae   : > { %v503_v53 = vadd.f32 %v502_v51, %v353_v36  ;;  %v428_v54 = vpop.f32.mrf.mxu0  ;;  %v481_v55 = vpop.f32.mrf.mxu1  ;;  %v470_v36 = vadd.f32 %v1133_v31, %v298_v29 }
  0xaf   : > { %v482_v17 = vadd.f32 %v481_v55, %v318_v11  ;;  %v429_v37 = vadd.f32 %v428_v54, %v318_v11  ;;  %v531_v54 = vld [vmem:[%s1199_s3 + $0x10] sm:$0xff]  ;;  %v538_v55 = vpop.permute.xlu0 %537 }
  0xb0   : > { %898 = vtanh.f32 %v503_v53  ;;  %v893_v57 = vpop.eup %892 }
  0xb1   : > { %900 = vtanh.f32 %v497_v52  ;;  %564 = vmatpush.msrb.mxu2 %v893_v57  ;;  %v895_v60 = vpop.eup %894  ;;  %v530_v52 = vld [vmem:[%s1199_s3 + $0x8] sm:$0xff] }
  0xb2   : > { %v897_v61 = vpop.eup %896  ;;  %902 = vtanh.f32 %v494_v59  ;;  %v543_v59 = vpop.permute.xlu1 %542 }
  0xb3   : > { %565 = vmatpush.msrb.mxu2 %v891_v56 }
  0xb5   : > { %566 = vmatpush.msrb.mxu2 %v895_v60 }
  0xb6   : > { %v899_v63 = vpop.eup %898  ;;  %v431_v0 = vpop.f32.mrf.mxu0 }
  0xb7   : > { %v484_v1 = vpop.f32.mrf.mxu1  ;;  %590 = vmatpush.msrb.mxu3 %v899_v63  ;;  %v901_v2 = vpop.eup %900  ;;  %v432_v32 = vadd.f32 %v431_v0, %v323_v9 }
  0xb8   : > { %v903_v3 = vpop.eup %902  ;;  %v485_v16 = vadd.f32 %v484_v1, %v323_v9 }
  0xb9   : > { %591 = vmatpush.msrb.mxu3 %v897_v61 }
  0xbb   : > { %592 = vmatpush.msrb.mxu3 %v901_v2 }
  0xbd   : > { %593 = vmatpush.msrb.mxu3 %v903_v3 }
  0xbe   : > { %v434_v4 = vpop.f32.mrf.mxu0 }
  0xbf   : > { %v487_v8 = vpop.f32.mrf.mxu1  ;;  %v435_v26 = vadd.f32 %v434_v4, %v328_v7  ;;  %v548_v4 = vpop.permute.xlu2 %547 }
  0xc0   : > { %v488_v13 = vadd.f32 %v487_v8, %v328_v7 }
  0xc6   : > { %v437_v10 = vpop.f32.mrf.mxu0 }
  0xc7   : > { %v490_v12 = vpop.f32.mrf.mxu1  ;;  %v438_v21 = vadd.f32 %v437_v10, %v333_v62 }
  0xc8   : > { %v491_v14 = vadd.f32 %v490_v12, %v333_v62 }
  0xca   : > { %904 = vtanh.f32 %v491_v14 }
  0xcb   : > { %906 = vtanh.f32 %v488_v13  ;;  %v673_v13 = vmul.f32 %v1028_v6, %v1028_v6 }
  0xcc   : > { %908 = vtanh.f32 %v485_v16 }
  0xcd   : > { %910 = vtanh.f32 %v482_v17 }
  0xce   : > { %v440_v19 = vpop.f32.mrf.mxu0 }
  0xcf   : > { %v441_v22 = vadd.f32 %v440_v19, %v338_v58  ;;  %v681_v19 = vsel %vm392_vm0, %v673_v13, 0.0 }
  0xd0   : > { %v905_v23 = vpop.eup %904 }
  0xd1   : > { %912 = vtanh.f32 %v441_v22  ;;  %594 = vmatpush.msrb.mxu3 %v905_v23  ;;  %v907_v27 = vpop.eup %906  ;;  %v682_v23 = vrot.slane %v681_v19, 4 }
  0xd2   : > { %914 = vtanh.f32 %v479_v18  ;;  %v909_v35 = vpop.eup %908 }
  0xd3   : > { %916 = vtanh.f32 %v438_v21  ;;  %595 = vmatpush.msrb.mxu3 %v907_v27  ;;  %v911_v39 = vpop.eup %910 }
  0xd4   : > { %918 = vtanh.f32 %v476_v24 }
  0xd5   : > { %920 = vtanh.f32 %v435_v26  ;;  %596 = vmatpush.msrb.mxu3 %v909_v35 }
  0xd6   : > { %922 = vtanh.f32 %v473_v28 }
  0xd7   : > { %v913_v40 = vpop.eup %912  ;;  %924 = vtanh.f32 %v432_v32  ;;  %597 = vmatpush.msrb.mxu3 %v911_v39 }
  0xd8   : > { %v915_v34 = vpop.eup %914  ;;  %926 = vtanh.f32 %v470_v36  ;;  %567 = vmatpush.msrb.mxu2 %v913_v40  ;;  %v683_v40 = vadd.f32 %v682_v23, %v681_v19 }
  0xd9   : > { %v917_v42 = vpop.eup %916  ;;  %928 = vtanh.f32 %v429_v37  ;;  %598 = vmatpush.msrb.mxu3 %v915_v34  ;;  %v672_v37 = vmul.f32 %v1026_v5, %v1026_v5 }
  0xda   : > { %v919_v31 = vpop.eup %918  ;;  %568 = vmatpush.msrb.mxu2 %v917_v42  ;;  %930 = vtanh.f32 %v426_v41 }
  0xdb   : > { %v921_v45 = vpop.eup %920  ;;  %599 = vmatpush.msrb.mxu3 %v919_v31  ;;  %932 = vtanh.f32 %v423_v44  ;;  %v674_v31 = vsel %vm392_vm0, %v672_v37, 0.0 }
  0xdc   : > { %v923_v47 = vpop.eup %922  ;;  %569 = vmatpush.msrb.mxu2 %v921_v45  ;;  %934 = vtanh.f32 %v420_v46  ;;  %v684_v46 = vrot.slane %v683_v40, 2 }
  0xdd   : > { %v925_v43 = vpop.eup %924  ;;  %600 = vmatpush.msrb.mxu3 %v923_v47  ;;  %936 = vtanh.f32 %v417_v48 }
  0xde   : > { %v927_v49 = vpop.eup %926  ;;  %570 = vmatpush.msrb.mxu2 %v925_v43 }
  0xdf   : > { %v929_v50 = vpop.eup %928  ;;  %601 = vmatpush.msrb.mxu3 %v927_v49  ;;  %v675_v49 = vrot.slane %v674_v31, 4 }
  0xe0   : > { %869 = vmatmul.msk.f32.vlgmr.msrb.gmra.mxu3 %vm550_vm2, %v529_v38  ;;  %571 = vmatpush.msrb.mxu2 %v929_v50  ;;  %v931_v33 = vpop.eup %930 }
  0xe1   : > { %v933_v51 = vpop.eup %932 }
  0xe2   : > { %572 = vmatpush.msrb.mxu2 %v931_v33  ;;  %v935_v30 = vpop.eup %934 }
  0xe3   : > { %v937_v53 = vpop.eup %936 }
  0xe4   : > { %573 = vmatpush.msrb.mxu2 %v933_v51 }
  0xe6   : > { %574 = vmatpush.msrb.mxu2 %v935_v30 }
  0xe8   : > { %870 = vmatmul.msk.f32.gmra.mxu3 %vm550_vm2, %v530_v52  ;;  %575 = vmatpush.msrb.mxu2 %v937_v53 }
  0xe9   : > { %866 = vmatmul.msk.f32.vlgmr.msrb.gmra.mxu2 %vm550_vm2, %v529_v38 }
  0xf0   : > { %871 = vmatmul.msk.f32.gmra.mxu3 %vm550_vm2, %v531_v54 }
  0xf1   : > { %867 = vmatmul.msk.f32.gmra.mxu2 %vm550_vm2, %v530_v52  ;;  %v685_v52 = vadd.f32 %v684_v46, %v683_v40 }
  0xf9   : > { %868 = vmatmul.msk.f32.gmra.mxu2 %vm550_vm2, %v531_v54 }
 0x163   : > { %v603_v56 = vpop.f32.mrf.mxu3 }
 0x164   : > { %v604_v57 = vadd.f32 %v603_v56, %v538_v55 }
 0x166   : > { %v614_v58 = vmul.f32 1.442695, %v604_v57 }
 0x168   : > { %938 = vpow2.f32 %v614_v58 }
 0x16b   : > { %v606_v60 = vpop.f32.mrf.mxu3 }
 0x16c   : > { %v607_v61 = vadd.f32 %v606_v60, %v543_v59  ;;  %v577_v62 = vpop.f32.mrf.mxu2 }
 0x16d   : > { %v578_v63 = vadd.f32 %v577_v62, %v538_v55 }
 0x16e   : > { %v939_v0 = vpop.eup %938  ;;  %v628_v1 = vmul.f32 1.442695, %v607_v61  ;;  %v641_v24 = vadd.f32 %v607_v61, %v604_v57 }
 0x16f   : > { %v612_v2 = vmul.f32 1.442695, %v578_v63  ;;  %v619_v3 = vrot.slane %v939_v0, 4 }
 0x170   : > { %940 = vpow2.f32 %v628_v1 }
 0x171   : > { %942 = vpow2.f32 %v612_v2  ;;  %v623_v10 = vmul.f32 %v619_v3, %v1028_v6 }
 0x173   : > { %v609_v7 = vpop.f32.mrf.mxu3  ;;  %v625_v18 = vadd.f32 %v623_v10, %v604_v57  ;;  %v676_v57 = vadd.f32 %v675_v49, %v674_v31 }
 0x174   : > { %v610_v8 = vadd.f32 %v609_v7, %v548_v4  ;;  %v580_v9 = vpop.f32.mrf.mxu2 }
 0x175   : > { %v581_v11 = vadd.f32 %v580_v9, %v543_v59  ;;  %v677_v2 = vrot.slane %v676_v57, 2 }
 0x176   : > { %v941_v12 = vpop.eup %940  ;;  %v644_v14 = vmul.f32 1.442695, %v610_v8  ;;  %v657_v35 = vadd.f32 %v641_v24, %v610_v8 }
 0x177   : > { %v943_v15 = vpop.eup %942  ;;  %v633_v16 = vrot.slane %v941_v12, 4  ;;  %v626_v17 = vmul.f32 1.442695, %v581_v11  ;;  %v640_v48 = vadd.f32 %v581_v11, %v578_v63  ;;  %v678_v13 = vadd.f32 %v677_v2, %v676_v57 }
 0x178   : > { %944 = vpow2.f32 %v644_v14  ;;  %v618_v20 = vrot.slane %v943_v15, 4  ;;  %v665_v44 = vsel %vm392_vm0, %v657_v35, 0.0 }
 0x179   : > { %946 = vpow2.f32 %v626_v17  ;;  %v637_v21 = vmul.f32 %v633_v16, %v625_v18  ;;  %v666_v43 = vrot.slane %v665_v44, 4  ;;  %v679_v19 = vrot.slane %v678_v13, 1 }
 0x17a   : > { %v622_v27 = vmul.f32 %v618_v20, %v1026_v5 }
 0x17b   : > { %v639_v29 = vadd.f32 %v637_v21, %v607_v61  ;;  %v667_v54 = vadd.f32 %v666_v43, %v665_v44  ;;  %v686_v61 = vrot.slane %v685_v52, 1 }
 0x17c   : > { %v583_v22 = vpop.f32.mrf.mxu2  ;;  %v624_v34 = vadd.f32 %v622_v27, %v578_v63 }
 0x17d   : > { %v584_v25 = vadd.f32 %v583_v22, %v548_v4  ;;  %v668_v62 = vrot.slane %v667_v54, 2  ;;  %v687_v10 = vadd.f32 %v686_v61, %v685_v52 }
 0x17e   : > { %v945_v26 = vpop.eup %944 }
 0x17f   : > { %v947_v28 = vpop.eup %946  ;;  %v649_v32 = vrot.slane %v945_v26, 4  ;;  %v642_v36 = vmul.f32 1.442695, %v584_v25  ;;  %v656_v30 = vadd.f32 %v640_v48, %v584_v25  ;;  %v669_v9 = vadd.f32 %v668_v62, %v667_v54 }
 0x180   : > { %v632_v39 = vrot.slane %v947_v28, 4  ;;  %v680_v26 = vadd.f32 %v679_v19, %v678_v13 }
 0x181   : > { %v653_v41 = vmul.f32 %v649_v32, %v639_v29  ;;  %948 = vpow2.f32 %v642_v36  ;;  %v658_v60 = vsel %vm392_vm0, %v656_v30, 0.0 }
 0x182   : > { %v636_v45 = vmul.f32 %v632_v39, %v624_v34  ;;  %v659_v4 = vrot.slane %v658_v60, 4 }
 0x183   : > { %v655_v42 = vadd.f32 %v653_v41, %v610_v8 }
 0x184   : > { %v638_v33 = vadd.f32 %v636_v45, %v581_v11  ;;  %v660_v14 = vadd.f32 %v659_v4, %v658_v60 }
 0x185   : > { %v689_v47 = vmul.f32 %v655_v42, %v655_v42  ;;  %v724_v3 = vsel %vm392_vm0, %v1028_v6, %v655_v42 }
 0x186   : > { %726 = vst [vmem:[%s261_s26 + $0x8] sm:$0xff] %v724_v3  ;;  %v661_v20 = vrot.slane %v660_v14, 2 }
 0x187   : > { %v949_v38 = vpop.eup %948  ;;  %v693_v50 = vrot.slane %v689_v47, 4 }
 0x188   : > { %v648_v51 = vrot.slane %v949_v38, 4 }
 0x189   : > { %v704_v53 = vsel %vm696_vm3, %v693_v50, 0.0 }
 0x18a   : > { %v705_v55 = vrot.slane %v704_v53, 4  ;;  %v652_v56 = vmul.f32 %v648_v51, %v638_v33 }
 0x18c   : > { %v706_v58 = vadd.f32 %v705_v55, %v704_v53  ;;  %v654_v59 = vadd.f32 %v652_v56, %v584_v25  ;;  %v662_v25 = vadd.f32 %v661_v20, %v660_v14 }
 0x18e   : > { %v707_v63 = vrot.slane %v706_v58, 2  ;;  %v688_v0 = vmul.f32 %v654_v59, %v654_v59  ;;  %v723_v1 = vsel %vm392_vm0, %v1026_v5, %v654_v59  ;;  %v670_v5 = vrot.slane %v669_v9, 1 }
 0x18f   : > { %725 = vst [vmem:[%s261_s26] sm:$0xff] %v723_v1  ;;  %v663_v35 = vrot.slane %v662_v25, 1 }
 0x190   : > { %v708_v7 = vadd.f32 %v707_v63, %v706_v58  ;;  %v692_v8 = vrot.slane %v688_v0, 4  ;;  %v671_v23 = vadd.f32 %v670_v5, %v669_v9 }
 0x191   : > { %v664_v39 = vadd.f32 %v663_v35, %v662_v25 }
 0x192   : > { %v709_v11 = vrot.slane %v708_v7, 1  ;;  %v697_v12 = vsel %vm696_vm3, %v692_v8, 0.0 }
 0x193   : > { %v698_v15 = vrot.slane %v697_v12, 4 }
 0x194   : > { %v710_v16 = vadd.f32 %v709_v11, %v708_v7 }
 0x195   : > { %v699_v17 = vadd.f32 %v698_v15, %v697_v12 }
 0x196   : > { %v712_v18 = vadd.f32 %v710_v16, %v687_v10 }
 0x197   : > { %v700_v6 = vrot.slane %v699_v17, 2 }
 0x198   : > { %v714_v21 = vmul.f32 -0.5, %v712_v18 }
 0x199   : > { %v701_v22 = vadd.f32 %v700_v6, %v699_v17 }
 0x19a   : > { %v873_v24 = vadd.f32 -6.4325695, %v714_v21 }
 0x19b   : > { %v702_v27 = vrot.slane %v701_v22, 1 }
 0x19c   : > { %v718_v28 = vadd.f32 %v873_v24, %v671_v23  ;;  %v729_v44 = vsel %vm727_vm4, %v873_v24, %v671_v23 }
 0x19d   : > { %v703_v29 = vadd.f32 %v702_v27, %v701_v22 }
 0x19e   : > { %v721_v32 = vmul.f32 1.442695, %v718_v28 }
 0x19f   : > { %v711_v36 = vadd.f32 %v703_v29, %v680_v26 }
 0x1a0   : > { %950 = vpow2.f32 %v721_v32 }
 0x1a1   : > { %v713_v37 = vmul.f32 -0.5, %v711_v36 }
 0x1a3   : > { %v872_v40 = vadd.f32 -6.4325695, %v713_v37 }
 0x1a5   : > { %v717_v41 = vadd.f32 %v872_v40, %v664_v39  ;;  %v728_v47 = vsel %vm727_vm4, %v872_v40, %v664_v39 }
 0x1a6   : > { %v951_v42 = vpop.eup %950 }
 0x1a7   : > { %v719_v34 = vmul.f32 1.442695, %v717_v41  ;;  %v732_v31 = vsel %vm730_vm5, %v729_v44, %v951_v42 }
 0x1a8   : > { %v735_v46 = vrot.slane %v732_v31, 4 }
 0x1a9   : > { %952 = vpow2.f32 %v719_v34 }
 0x1af   : > { %v953_v45 = vpop.eup %952 }
 0x1b0   : > { %v731_v43 = vsel %vm730_vm5, %v728_v47, %v953_v45 }
 0x1b1   : > { %v736_v48 = vsel %vm392_vm0, %v731_v43, %v735_v46 }
 0x1b2   : > { %738 = vst [vmem:[%s267_s29] sm:$0x77] %v736_v48 }
 0x1b3 PF: > { %s17_s21 = sadd.s32 1, %s960_s21  }
 0x1b4   : > { %p14_p4 = scmp.ge.s32.totalorder %s17_s21, 4  }
 0x1b6   :  { %16 = sbr.rel (!%p14_p4) target bundleno = 1 (0x1), region = 82 }

</bundles_post_ra>
